<compile_context>
chip_gen: v7x
topology: tpu7x:2x2x1
jax: 0.10.0
libtpu: 0.0.40
codegen_flags: <defaults>
</compile_context>

<pallas_src>
import math

import jax
import jax.numpy as jnp
from jax.experimental import pallas as pl
from jax.experimental.pallas import tpu as pltpu


# --------------------------------------------------------------------------
# helpers
# --------------------------------------------------------------------------
def _vmem_capacity_bytes():
    try:
        return int(pltpu.get_tpu_info().vmem_capacity_bytes)
    except Exception:
        return None


def _pick_tile(dim, candidates):
    """Largest candidate tile that evenly divides `dim`, else the full dim."""
    for c in candidates:
        if dim >= c and dim % c == 0:
            return c
    return dim


def _divisors_desc(n):
    small, large = [], []
    i = 1
    while i * i <= n:
        if n % i == 0:
            small.append(i)
            large.append(n // i)
        i += 1
    return sorted(set(small + large), reverse=True)


def _pick_bb(batch, per_batch_bytes, budget, cap):
    """Largest divisor of `batch` within budget/cap, keeping >= 2 grid steps."""
    for d in _divisors_desc(batch):
        if d > cap or d * per_batch_bytes > budget:
            continue
        if batch // d < 2:        # keep >=2 parallel steps (v7x megacore)
            continue
        return d
    return 1


# --------------------------------------------------------------------------
# kernels
# --------------------------------------------------------------------------
def _fused_kernel(bb, M, N):
    """Fused tiny-batch path: lane-dense (N, bb*M) output slab."""

    def kernel(x_ref, y_ref, o_ref):
        # x_ref: (bb, M, K), y_ref: (bb, K, N)
        r = jax.lax.dot_general(
            x_ref[...], y_ref[...],
            dimension_numbers=(((2,), (1,)), ((0,), (0,))),
            preferred_element_type=jnp.float32,
        )                                   # (bb, M, N)
        r2 = r.reshape(bb * M, N)           # merge leading dims (layout-preserving, M%8==0)
        o_ref[...] = r2.T.astype(o_ref.dtype)   # (N, bb*M): lane-dense stores

    return kernel


def _single_step_kernel(x_ref, y_ref, o_ref):
    """K not tiled: no accumulator scratch, no init/finalize phases."""
    o_ref[...] = jnp.dot(
        x_ref[...], y_ref[...], preferred_element_type=jnp.float32
    ).astype(o_ref.dtype)


def _acc_kernel(x_ref, y_ref, o_ref, acc_ref):
    k = pl.program_id(3)

    @pl.when(k == 0)
    def _init():
        acc_ref[...] = jnp.zeros_like(acc_ref)

    acc_ref[...] += jnp.dot(
        x_ref[...], y_ref[...], preferred_element_type=jnp.float32
    )

    @pl.when(k == pl.num_programs(3) - 1)
    def _finalize():
        o_ref[...] = acc_ref[...].astype(o_ref.dtype)


# --------------------------------------------------------------------------
# core batched matmul
# --------------------------------------------------------------------------
def _bmm(x3, y3, out_dtype):
    """x3: (Bx, M, K), y3: (By, K, N) with Bx, By in {1, B}. Returns (B, M, N)."""
    Bx, M, K = x3.shape
    By, _, N = y3.shape
    B = max(Bx, By)
    assert Bx in (1, B) and By in (1, B)

    itemsize = jnp.dtype(x3.dtype).itemsize
    out_itemsize = jnp.dtype(out_dtype).itemsize

    cap = _vmem_capacity_bytes()
    if cap is not None:
        tile_budget = min(int(cap * 0.4), 48 * 1024 * 1024)   # v7x: ~25 MiB, v5e/v6e: 48 MiB
        vmem_limit = min(int(cap * 0.75), 100 * 1024 * 1024)
    else:
        tile_budget = 20 * 1024 * 1024
        vmem_limit = 32 * 1024 * 1024

    # ---------------- fused tiny-batch path (lane-dense output) -------------
    if B > 1 and N < 128 and M <= 256 and K <= 1024 and M % 8 == 0:
        per_batch_bytes = (
            2 * (M * K + K * N) * itemsize        # double-buffered inputs
            + 2 * M * N * out_itemsize            # double-buffered output slab
            + M * N * 4                           # f32 intermediate
        )
        bb = _pick_bb(B, per_batch_bytes, budget=2 * 1024 * 1024, cap=256)
        if bb >= 2:
            xb = jnp.broadcast_to(x3, (B, M, K)) if Bx == 1 else x3
            yb = jnp.broadcast_to(y3, (B, K, N)) if By == 1 else y3
            nb = B // bb

            out_slab = pl.pallas_call(
                _fused_kernel(bb, M, N),
                out_shape=jax.ShapeDtypeStruct((nb, N, bb * M), out_dtype),
                grid_spec=pltpu.PrefetchScalarGridSpec(
                    num_scalar_prefetch=0,
                    grid=(nb,),
                    in_specs=[
                        pl.BlockSpec((bb, M, K), lambda g: (g, 0, 0)),
                        pl.BlockSpec((bb, K, N), lambda g: (g, 0, 0)),
                    ],
                    out_specs=pl.BlockSpec((None, N, bb * M), lambda g: (g, 0, 0)),
                ),
                compiler_params=pltpu.CompilerParams(
                    dimension_semantics=("parallel",),
                    vmem_limit_bytes=vmem_limit,
                ),
                cost_estimate=pl.CostEstimate(
                    flops=2 * B * M * N * K,
                    transcendentals=0,
                    bytes_accessed=(B * (M * K + K * N) * itemsize
                                    + B * M * N * out_itemsize),
                ),
            )(xb, yb)

            # (nb, N, bb*M) -> (B, M, N): cheap wrapper-side layout plumbing.
            return (out_slab.reshape(nb, N, bb, M)
                    .transpose(0, 2, 3, 1)
                    .reshape(B, M, N))

    # ---------------- generic tiled path ------------------------------------
    tm = _pick_tile(M, (512, 256, 128, 64, 32, 16, 8))
    tn = _pick_tile(N, (512, 256, 128))
    tk = _pick_tile(K, (512, 256, 128))

    def _fits(tm_, tn_, tk_):
        acc_bytes = tm_ * tn_ * 4 if (K // tk_) > 1 else 0
        return (2 * (tm_ * tk_ + tk_ * tn_) * itemsize
                + 2 * tm_ * tn_ * out_itemsize
                + acc_bytes) <= tile_budget

    # Grow tiles toward 1024 where divisibility and the VMEM budget allow
    # (mostly useful on v5e/v6e with 128 MiB VMEM; v7x budget keeps this tame).
    if tk < 1024 and K % (2 * tk) == 0 and _fits(tm, tn, 2 * tk):
        tk *= 2
    if tn < 1024 and N % (2 * tn) == 0 and _fits(tm, 2 * tn, tk):
        tn *= 2
    if tm < 1024 and M % (2 * tm) == 0 and _fits(2 * tm, tn, tk):
        tm *= 2

    nm, nn, nk = M // tm, N // tn, K // tk
    grid = (B, nm, nn, nk)

    if Bx == 1:
        x_map = lambda b, i, j, k: (0, i, k)      # batch-invariant: no HBM duplication
    else:
        x_map = lambda b, i, j, k: (b, i, k)
    if By == 1:
        y_map = lambda b, i, j, k: (0, k, j)
    else:
        y_map = lambda b, i, j, k: (b, k, j)
    o_map = lambda b, i, j, k: (b, i, j)

    if nk == 1:
        kernel = _single_step_kernel
        scratch = []
    else:
        kernel = _acc_kernel
        scratch = [pltpu.VMEM((tm, tn), jnp.float32)]

    # Honest bytes estimate: x refetched nn times, y refetched nm times.
    bytes_accessed = (
        B * M * K * itemsize * nn
        + B * K * N * itemsize * nm
        + B * M * N * out_itemsize
    )

    out = pl.pallas_call(
        kernel,
        out_shape=jax.ShapeDtypeStruct((B, M, N), out_dtype),
        grid_spec=pltpu.PrefetchScalarGridSpec(
            num_scalar_prefetch=0,
            grid=grid,
            in_specs=[
                pl.BlockSpec((None, tm, tk), x_map),
                pl.BlockSpec((None, tk, tn), y_map),
            ],
            out_specs=pl.BlockSpec((None, tm, tn), o_map),
            scratch_shapes=scratch,
        ),
        compiler_params=pltpu.CompilerParams(
            dimension_semantics=("parallel", "parallel", "parallel", "arbitrary"),
            vmem_limit_bytes=vmem_limit,
        ),
        cost_estimate=pl.CostEstimate(
            flops=2 * B * M * N * K,
            transcendentals=0,
            bytes_accessed=bytes_accessed,
        ),
    )(x3, y3)

    return out


# --------------------------------------------------------------------------
# public wrapper: torch.matmul semantics for >= 2-D operands
# --------------------------------------------------------------------------
def pallas_matmul(x: jax.Array, y: jax.Array) -> jax.Array:
    assert x.ndim >= 2 and y.ndim >= 2, "1-D operands not supported"  # TODO(synk): 1-D promote
    assert x.shape[-1] == y.shape[-2], "inner dims must match"

    if not (jnp.issubdtype(x.dtype, jnp.floating)
            and jnp.issubdtype(y.dtype, jnp.floating)):
        raise NotImplementedError("pallas_matmul: only floating dtypes supported")
    out_dtype = jnp.result_type(x.dtype, y.dtype)
    if out_dtype == jnp.float64:
        raise NotImplementedError("pallas_matmul: float64 not supported on TPU MXU")
    if x.dtype != out_dtype:
        x = x.astype(out_dtype)
    if y.dtype != out_dtype:
        y = y.astype(out_dtype)

    M, K = x.shape[-2], x.shape[-1]
    N = y.shape[-1]
    batch_shape = jnp.broadcast_shapes(x.shape[:-2], y.shape[:-2])
    B = math.prod(batch_shape) if batch_shape else 1

    Bx = math.prod(x.shape[:-2]) if x.ndim > 2 else 1
    By = math.prod(y.shape[:-2]) if y.ndim > 2 else 1

    # Shared weight (y has no real batch): fold the batch into M — one 2-D
    # matmul, no broadcast materialization at all.
    if By == 1:
        x2 = x.reshape(Bx * M, K)
        y2 = y.reshape(K, N)
        out = _bmm(x2[None], y2[None], out_dtype)          # (1, Bx*M, N)
        return out.reshape(*batch_shape, M, N)

    # General batched case.
    if Bx == B:
        x3 = x.reshape(B, M, K)
    elif Bx == 1:
        x3 = x.reshape(1, M, K)                            # batch-invariant, not materialized
    else:
        x3 = jnp.broadcast_to(x, (*batch_shape, M, K)).reshape(B, M, K)

    if By == B:
        y3 = y.reshape(B, K, N)
    else:
        y3 = jnp.broadcast_to(y, (*batch_shape, K, N)).reshape(B, K, N)

    out = _bmm(x3, y3, out_dtype)                          # (B, M, N)
    return out.reshape(*batch_shape, M, N)


# --------------------------------------------------------------------------
if __name__ == "__main__":
    key = jax.random.PRNGKey(0)
    k1, k2, k3, k4, k5, k6 = jax.random.split(key, 6)

    # 1) GPT-J-attention-like tiny shapes -> fused batch path with lane-dense slab.
    x = jax.random.normal(k1, (2, 4, 8, 32), dtype=jnp.float32)
    y = jax.random.normal(k2, (2, 4, 32, 8), dtype=jnp.float32)
    out = jax.block_until_ready(pallas_matmul(x, y))
    ref = jnp.matmul(x, y)
    assert out.shape == ref.shape
    assert jnp.allclose(out, ref, atol=1e-5, rtol=1e-5)

    # 2) Larger shape -> K-tiled f32 accumulator path.
    a = jax.random.normal(k3, (2, 256, 384), dtype=jnp.float32)
    b = jax.random.normal(k4, (2, 384, 128), dtype=jnp.float32)
    out2 = jax.block_until_ready(pallas_matmul(a, b))
    ref2 = jnp.matmul(a, b)
    assert out2.shape == ref2.shape
    assert jnp.allclose(out2, ref2, atol=1e-3, rtol=1e-3)

    # 3) Shared 2-D weight (torch.matmul broadcasting) -> batch folded into M.
    w = jax.random.normal(k5, (32, 8), dtype=jnp.float32)
    out3 = jax.block_until_ready(pallas_matmul(x, w))
    ref3 = jnp.matmul(x, w)
    assert out3.shape == ref3.shape
    assert jnp.allclose(out3, ref3, atol=1e-5, rtol=1e-5)

    # 4) Batch-invariant x against a batched y -> no broadcast materialization.
    q = jax.random.normal(k6, (8, 32), dtype=jnp.float32)
    v = jax.random.normal(k2, (2, 4, 32, 256), dtype=jnp.float32)
    out4 = jax.block_until_ready(pallas_matmul(q, v))
    ref4 = jnp.matmul(q, v)
    assert out4.shape == ref4.shape
    assert jnp.allclose(out4, ref4, atol=1e-4, rtol=1e-4)

    print("KERNEL_OK")
</pallas_src>

<mosaic_0001>
module attributes {stable_mosaic.version = 11 : i64} {
  func.func @kernel(%arg0: i32, %arg1: memref<4x8x32xf32, #tpu.memory_space<vmem>>, %arg2: memref<4x32x8xf32, #tpu.memory_space<vmem>>, %arg3: memref<1x8x32xf32, #tpu.memory_space<vmem>>) attributes {dimension_semantics = [#tpu.dimension_semantics<parallel>], iteration_bounds = array<i64: 2>, scalar_prefetch = 0 : i64, scratch_operands = 0 : i64, tpu.core_type = #tpu.core_type<tc>, window_params = [{transform_indices = @transform_0, window_bounds = array<i64: 4, 8, 32>}, {transform_indices = @transform_1, window_bounds = array<i64: 4, 32, 8>}, {transform_indices = @transform_2, window_bounds = array<i64: 1, 8, 32>}]} {
    %c0 = arith.constant 0 : index
    %c0_0 = arith.constant 0 : index
    %c0_1 = arith.constant 0 : index
    %0 = vector.load %arg1[%c0, %c0_0, %c0_1] : memref<4x8x32xf32, #tpu.memory_space<vmem>>, vector<4x8x32xf32>
    %c0_2 = arith.constant 0 : index
    %c0_3 = arith.constant 0 : index
    %c0_4 = arith.constant 0 : index
    %1 = vector.load %arg2[%c0_2, %c0_3, %c0_4] : memref<4x32x8xf32, #tpu.memory_space<vmem>>, vector<4x32x8xf32>
    %cst = arith.constant dense<0.000000e+00> : vector<4x8x8xf32>
    %2 = tpu.matmul %0, %1, %cst {dimension_numbers = #tpu.dot_dimension_numbers<[2], [1], [1], [2], [0, 0, 0, 1, 1, 2], [0], [0]>} : vector<4x8x32xf32>, vector<4x32x8xf32>, vector<4x8x8xf32> -> vector<4x8x8xf32>
    %3 = vector.shape_cast %2 : vector<4x8x8xf32> to vector<32x8xf32>
    %4 = tpu.transpose %3, [1, 0] : vector<32x8xf32> -> vector<8x32xf32>
    %c0_5 = arith.constant 0 : index
    %c0_6 = arith.constant 0 : index
    %c0_7 = arith.constant 0 : index
    %5 = vector.load %arg3[%c0_5, %c0_6, %c0_7] : memref<1x8x32xf32, #tpu.memory_space<vmem>>, vector<1x8x32xf32>
    %6 = vector.shape_cast %5 : vector<1x8x32xf32> to vector<8x32xf32>
    %7 = vector.shape_cast %4 : vector<8x32xf32> to vector<1x8x32xf32>
    tpu.vector_store %arg3[%c0_5, %c0_6, %c0_7], %7 {strides = array<i32>} : memref<1x8x32xf32, #tpu.memory_space<vmem>>, vector<1x8x32xf32>,
    return
  }
  func.func @transform_0(%arg0: i32) -> (i32, i32, i32) {
    %c0_i32 = arith.constant 0 : i32
    %c0_i32_0 = arith.constant 0 : i32
    %c0_i32_1 = arith.constant 0 : i32
    return %arg0, %c0_i32, %c0_i32_0 : i32, i32, i32
  }
  func.func @transform_1(%arg0: i32) -> (i32, i32, i32) {
    %c0_i32 = arith.constant 0 : i32
    %c0_i32_0 = arith.constant 0 : i32
    %c0_i32_1 = arith.constant 0 : i32
    return %arg0, %c0_i32, %c0_i32_0 : i32, i32, i32
  }
  func.func @transform_2(%arg0: i32) -> (i32, i32, i32) {
    %c0_i32 = arith.constant 0 : i32
    %c0_i32_0 = arith.constant 0 : i32
    %c0_i32_1 = arith.constant 0 : i32
    return %arg0, %c0_i32, %c0_i32_0 : i32, i32, i32
  }
}

</mosaic_0001>

<bundles_post_ra>
// kernel: tpu_custom_call.1
= control target key start
LH: loop header
LB: loop body
LE: loop exit
PB: predicated region body
PF: predicated region fallthrough
CT: control target
= control target key end

     0   :  { %7 = vsyncpa [#allocation3], 0  ;;  %s967_s0 = inlined_call_operand.vmem [shape: f32[8,8,32], index: 0, kind: input, shape index: {}]   ;;  %s968_s1 = inlined_call_operand.vmem [shape: f32[8,32,8], index: 1, kind: input, shape index: {}]   ;;  %s969_s2 = inlined_call_operand.hbm [shape: f32[2,8,32], index: 2, kind: output, shape index: {}]  }
   0x1   :  { %9 = vsyncpa [#allocation3 + $0x1], 0  ;;  %s832_s9 = smov 0   ;;  %s834_s10 = smov 0  }
   0x2   :  { %s836_s11 = smov 0   ;;  %s838_s12 = smov 0  }
   0x3 LB: > { %s853_s13 = sadd.s32 4294967295, %s811_s12   ;;  %s600_s14 = sadd.s32 4294967294, %s811_s12   ;;  %s811_s12 = sphi %s838_s12, %s975_s12   ;;  %s807_s11 = sphi %s836_s11, %s974_s11   ;;  %s803_s10 = sphi %s834_s10, %s973_s10   ;;  %s799_s9 = sphi %s832_s9, %s972_s9  }
   0x4   : > { %s857_s15 = sadd.s32 1, %s811_s12   ;;  %s74_s16 = sadd.s32 1, %s807_s11 }
   0x5   : > { %s71_s17 = ssub.s32 %s811_s12, %s857_s15  ;;  %p84_p0 = scmp.ne.s32.totalorder %s807_s11, %s803_s10 }
   0x6   : > { %p72_p1 = scmp.eq.s32.totalorder %s71_s17, 0  ;;  %p85_p2 = scmp.eq.s32.totalorder %s853_s13, 1 }
   0x7   : > { %p90_p3 = scmp.ne.s32.totalorder %s803_s10, %s799_s9  ;;  %p91_p4 = scmp.eq.s32.totalorder %s600_s14, 1 }
   0x8   : > { %s868_s18 = scalar_select %p72_p1, %s807_s11, %s74_s16  }
   0x9   : > { %p870_p5 = por %p85_p2, %p84_p0  ;;  %p874_p6 = por %p91_p4, %p90_p3 }
   0xa   : > { %p603_p7 = scmp.ge.s32.totalorder %s811_s12, 1  ;;  %p128_p8 = scmp.lt.s32.totalorder %s811_s12, 3 }
   0xc   : > { %p129_p9 = pnand %p603_p7, %p128_p8 }
   0xd   : > { %s605_s21 = sshll.u32 (!%p129_p9), %s853_s13, 2  ;;  %v813_v0 = vmov (!%p129_p9), 0.0|0.0   ;;  %vm814_vm0 = vmmov (!%p129_p9), 0   ;;  %v815_v1 = vmov (!%p129_p9), 0.0   ;;  %vm189_vm1 = vcmask (!%p129_p9), 261120   ;;  %s153_s30 = sand.u32 (!%p129_p9), 1, %s803_s10  }
   0xe   : > { %132 = sbr.rel (%p129_p9) target bundleno = 389 (0x185), region = 28  ;;  %683 = vmatprep.subr.bf16.mxu0 (!%p129_p9), %v813_v0  ;;  %p157_p10 = scmp.lt.s32.totalorder (!%p129_p9), %s605_s21, 7  ;;  %689 = vmatprep.subr.bf16.mxu1 (!%p129_p9), %v813_v0 }
   0xf   : > { %647 = vmatprep.mubr.msk.f32.mxu0 (!%p129_p9), %vm814_vm0, %v815_v1  ;;  %658 = vmatprep.mubr.msk.f32.mxu1 (!%p129_p9), %vm814_vm0, %v815_v1  ;;  %s604_s3 = sshll.u32 (!%p129_p9), %s153_s30, 3  ;;  %s615_s4 = sshll.u32 (!%p129_p9), %s853_s13, 7 }
  0x10   : > { %s155_s5 = scalar_lea.vmem (!%p129_p9), [#allocation2], %s604_s3  ;;  %s924_s14 = scalar_lea.hbm (!%p129_p9), %s969_s2, %s615_s4 }
  0x11   : > { %s529_s6 = sshll.u32 (!%p129_p9), %s155_s5, 4  ;;  %s516_s16 = scalar_lea.sflag (!%p129_p9), [#allocation3], %s153_s30  ;;  %s926_s6 = int_to_ptr.vmem [resolvable:$true] %s529_s6 }
  0x12   : > { %s749_s17 = scalar_lea.vmem (!%p129_p9), %s926_s6, 128  ;;  %s816_s13 = smov (!%p129_p9), [#allocation2]  }
  0x13   : > { %p750_p11 = scmp.ne.s32.totalorder (!%p129_p9), %s926_s6, %s749_s17 }
  0x15   : > { %s977_s21 = smov (!%p157_p10, %s605_s21), 7  ;;  %p751_p12 = pnand %p750_p11, %p870_p5 }
  0x16   : > { %s618_s22 = sshll.u32 %s977_s21, 5  ;;  %s606_s26 = sshll.u32 %s977_s21, 3 }
  0x17   : > { %s886_s25 = scalar_lea.vmem %s968_s1, %s618_s22  ;;  %s899_s29 = scalar_lea.vmem %s967_s0, %s606_s26 }
  0x18   : > { %v173_v2 = vld [vmem:[%s886_s25] sm:$0xff]  ;;  %v174_v3 = vld [vmem:[%s886_s25 + $0x8] sm:$0xff]  ;;  %v175_v7 = vld [vmem:[%s886_s25 + $0x10] sm:$0xff]  ;;  %p752_p13 = pneg %p751_p12  ;;  %s753_s21 = sshll.u32 %s816_s13, 4  ;;  %s754_s21 = int_to_ptr.vmem [resolvable:$false] %s753_s21 }
  0x19   : > { %v177_v4 = vld [vmem:[%s886_s25 + $0x20] sm:$0xff]  ;;  %v684_v5 = vpack.c.bf16 %v174_v3, %v173_v2  ;;  %v178_v6 = vld [vmem:[%s886_s25 + $0x28] sm:$0xff]  ;;  %v176_v8 = vld [vmem:[%s886_s25 + $0x18] sm:$0xff]  ;;  %s755_s22 = scalar_lea.vmem %s754_s21, 256  ;;  %p756_p0 = scmp.lt.s32.totalorder %s926_s6, %s754_s21 }
  0x1a   : > { %v690_v9 = vpack.c.bf16 %v178_v6, %v177_v4  ;;  %v179_v10 = vld [vmem:[%s886_s25 + $0x30] sm:$0xff]  ;;  %v180_v11 = vld [vmem:[%s886_s25 + $0x38] sm:$0xff]  ;;  %v687_v12 = vpack.c.bf16 %v176_v8, %v175_v7  ;;  %v181_v14 = vld [vmem:[%s886_s25 + $0x40] sm:$0xff]  ;;  %p757_p1 = scmp.lt.s32.totalorder %s755_s22, %s749_s17 }
  0x1b   : > { %685 = vmatpush3.bf16.msra.mxu0 %v684_v5  ;;  %v693_v13 = vpack.c.bf16 %v180_v11, %v179_v10  ;;  %v182_v15 = vld [vmem:[%s886_s25 + $0x48] sm:$0xff]  ;;  %v185_v16 = vld [vmem:[%s886_s25 + $0x60] sm:$0xff]  ;;  %v183_v22 = vld [vmem:[%s886_s25 + $0x50] sm:$0xff] }
  0x1c   : > { %686 = vmatprep.subr.bf16.mxu0 %v813_v0  ;;  %691 = vmatpush3.bf16.msra.mxu1 %v690_v9  ;;  %v186_v17 = vld [vmem:[%s886_s25 + $0x68] sm:$0xff]  ;;  %v169_v18 = vld [vmem:[%s899_s29] sm:$0xff]  ;;  %v696_v19 = vpack.c.bf16 %v182_v15, %v181_v14  ;;  %v184_v23 = vld [vmem:[%s886_s25 + $0x58] sm:$0xff]  ;;  %p758_p2 = por %p757_p1, %p756_p0 }
  0x1d   : > { %692 = vmatprep.subr.bf16.mxu1 %v813_v0  ;;  %v170_v20 = vld [vmem:[%s899_s29 + $0x8] sm:$0xff]  ;;  %v702_v21 = vpack.c.bf16 %v186_v17, %v185_v16  ;;  %v187_v24 = vld [vmem:[%s886_s25 + $0x70] sm:$0xff]  ;;  %v188_v25 = vld [vmem:[%s886_s25 + $0x78] sm:$0xff]  ;;  %v699_v26 = vpack.c.bf16 %v184_v23, %v183_v22 }
  0x1e   : > { %v705_v27 = vpack.c.bf16 %v188_v25, %v187_v24  ;;  %v171_v28 = vld [vmem:[%s899_s29 + $0x10] sm:$0xff]  ;;  %v172_v29 = vld [vmem:[%s899_s29 + $0x18] sm:$0xff]  ;;  %p759_p3 = pnand %p758_p2, %p752_p13 }
  0x1f   : > { %688 = vmatpush3.bf16.msra.mxu0 %v687_v12 }
  0x20   : > { %694 = vmatpush3.bf16.msra.mxu1 %v693_v13  ;;  %695 = vmatprep.subr.bf16.mxu0 %v813_v0 }
  0x21   : > { %701 = vmatprep.subr.bf16.mxu1 %v813_v0 }
  0x22   : > { %648 = vmatmul.mubr.msk.f32.vlgmr.msra.gmra.mrb[0].mxu0 %vm189_vm1, %v169_v18 }
  0x23   : > { %697 = vmatpush3.bf16.msra.mxu0 %v696_v19  ;;  %659 = vmatmul.mubr.msk.f32.vlgmr.msra.gmra.mrb[0].mxu1 %vm189_vm1, %v170_v20 }
  0x24   : > { %698 = vmatprep.subr.bf16.mxu0 %v813_v0  ;;  %703 = vmatpush3.bf16.msra.mxu1 %v702_v21 }
  0x25   : > { %669 = vmatprep.mubr.msk.f32.mxu0 %vm814_vm0, %v815_v1  ;;  %704 = vmatprep.subr.bf16.mxu1 %v813_v0 }
  0x26   : > { %680 = vmatprep.mubr.msk.f32.mxu1 %vm814_vm0, %v815_v1 }
  0x27   : > { %700 = vmatpush3.bf16.msra.mxu0 %v699_v26 }
  0x28   : > { %706 = vmatpush3.bf16.msra.mxu1 %v705_v27 }
  0x2a   : > { %670 = vmatmul.mubr.msk.f32.vlgmr.msra.gmra.mrb[2].mxu0 %vm189_vm1, %v171_v28 }
  0x2b   : > { %681 = vmatmul.mubr.msk.f32.vlgmr.msra.gmra.mrb[2].mxu1 %vm189_vm1, %v172_v29 }
  0xf5   : > { %v259_v30 = vpop.f32.mrb[0].mxu0 }
  0xf6   : > { %482 = vxpose.xlu0.b32.start [1/4] (short) (narrow) %v259_v30, 8  ;;  %v649_v31 = vpop.f32.mrb[1].mxu0  ;;  %v332_v32 = vpop.f32.mrb[0].mxu1 }
  0xf7   : > { %v660_v33 = vpop.f32.mrb[1].mxu1 }
  0xfa   : > { %483 = vxpose.xlu0.b32.cont [2/4] (short) (narrow) %v332_v32, 8 }
  0xfd   : > { %v405_v34 = vpop.f32.mrb[2].mxu0 }
  0xfe   : > { %484 = vxpose.xlu0.b32.cont [3/4] (short) (narrow) %v405_v34, 8  ;;  %v671_v35 = vpop.f32.mrb[3].mxu0  ;;  %v478_v36 = vpop.f32.mrb[2].mxu1 }
  0xff   : > { %v682_v37 = vpop.f32.mrb[3].mxu1 }
 0x102   : > { %485 = vxpose.xlu0.b32.end [4/4] (short) (narrow) %v478_v36, 8 }
 0x176   : > { %v498_v38 = vpop.trf.xlu0 }
 0x177   : > { %514 = vst.msk [vmem:[%s155_s5] sm:$0xff] %vm189_vm1, %v498_v38 }
 0x178   : > { %762 = shalt.err (!%p759_p3)
}
 0x179   : > { %s763_s23 = scalar_lea.hbm %s924_s14, 128  ;;  %s767_s26 = scalar_lea.hbm %s969_s2, 256 }
 0x17a   : > { %p764_p4 = scmp.ne.s32.totalorder %s924_s14, %s763_s23  ;;  %p768_p9 = scmp.lt.u32.totalorder %s924_s14, %s969_s2 }
 0x17b   : > { %p769_p10 = scmp.lt.u32.totalorder %s767_s26, %s763_s23  ;;  %p771_p12 = scmp.lt.u32.totalorder %s763_s23, %s924_s14 }
 0x17c   : > { %p765_p7 = pnand %p764_p4, %p870_p5 }
 0x17d   : > { %p770_p11 = por %p769_p10, %p768_p9 }
 0x17e   : > { %p766_p8 = pneg %p765_p7 }
 0x17f   : > { %p772_p13 = por %p771_p12, %p770_p11 }
 0x181   : > { %p773_p0 = pnand %p772_p13, %p766_p8 }
 0x183   : > { %776 = shalt.err (!%p773_p0)
}
 0x184   : > { %707 = dma.vmem_to_hbm [thread:$0]  (%p870_p5), %s926_s6, 128, %s924_s14, %s516_s16  }
 0x185 PF: > { %p713_p1 = scmp.ge.s32.totalorder %s811_s12, 2  ;;  %s541_s29 = sand.u32 1, %s799_s9  }
 0x186   : > { %s542_s30 = scalar_lea.sflag [#allocation3], %s541_s29 }
 0x187   : > { %p710_p2 = pnand %p713_p1, %p874_p6 }
 0x189   : > { %794 = dma.done.wait (!%p710_p2), %s542_s30, 128  }
 0x18a   : > { %796 = vsyncadd (!%p710_p2), %s542_s30, 4294967168  ;;  %p12_p3 = scmp.ge.s32.totalorder %s857_s15, 4   ;;  %s972_s9 = smov %s803_s10 }
 0x18b   : > { %s973_s10 = smov %s807_s11  ;;  %s974_s11 = smov %s868_s18 }
 0x18c   : > { %s975_s12 = smov %s857_s15  ;;  %14 = sbr.rel (!%p12_p3) target bundleno = 3 (0x3), region = 66 }
 0x193   :  { %547 = vsyncpa [#allocation3], 1 }
 0x194   :  { %549 = vsyncpa [#allocation3 + $0x1], 1 }

</bundles_post_ra>
